<compile_context>
chip_gen: v7x
topology: tpu7x:2x2x1
jax: 0.10.0
libtpu: 0.0.40
codegen_flags: <defaults>
</compile_context>

<pallas_src>
import functools
from math import sqrt

import jax
import jax.numpy as jnp
from jax.experimental import pallas as pl
from jax.experimental.pallas import tpu as pltpu


def _round_up(x, m):
    return ((x + m - 1) // m) * m


def _critic_kernel(q0, q1, x_ref, wbd_ref, w2a_ref, w3_ref, bias_ref, o_ref):
    """One batch tile:
         g   = [x1|x2] @ [[W1,0],[0,W2b]]           (single MXU pass, f32 acc)
         h1  = relu(g[:, :q0] + b1)
         h2  = relu(h1 @ W2a + g[:, q0:] + b2)
         q   = sum(h2 * w3, -1) + b3                (VPU mul + XLU lane reduce)
    """
    # Fused layer-1 + x2-path matmul (bf16 operands, f32 MXU accumulation).
    g = jnp.dot(x_ref[...], wbd_ref[...], preferred_element_type=jnp.float32)
    g = g + bias_ref[0:1, :q0 + q1]           # row 0 = [b1 | zeros] -> only h1 part biased

    h1 = jnp.maximum(g[:, :q0], 0.0)

    # Layer 2: h1 @ W2a + (x2 @ W2b already in g[:, q0:]) + b2, relu.
    h2 = jnp.dot(h1.astype(jnp.bfloat16), w2a_ref[...],
                 preferred_element_type=jnp.float32)
    h2 = jnp.maximum(h2 + g[:, q0:] + bias_ref[1:2, :q1], 0.0)

    # ln3 (N=1): VPU multiply + lane reduction, keeps the MXU-push slot free.
    q = jnp.sum(h2 * w3_ref[...], axis=-1, keepdims=True) + bias_ref[2:3, 0:1]

    # TODO(synk): a lane-dense (1, TB) output row would free the vst slot, but the
    # required (TB,1)->(1,TB) relayout is not guaranteed to lower on all jax
    # versions; keep the (TB,1) column (store slot is not the binding slot here).
    o_ref[...] = q


# Tile-rows cap. Sweep 2048/4096/8192 if the 0.35 us/step overhead is still visible;
# 2048 keeps per-tile VMEM (~5 MiB incl. double buffers) far below every gen's limit.
_TB_CAP = 2048


@jax.jit
def critic_forward(x1, x2, packed):
    """x1: (B, nb_obs) f32, x2: (B, nb_action) f32 -> (B, 1) f32."""
    wbd, w2a, w3_row, bias = packed
    B = x1.shape[0]
    d_in = wbd.shape[0]
    q0, q1 = w2a.shape
    assert x1.shape[1] + x2.shape[1] == d_in

    # Single fused per-call prep op: concat + bf16 cast (+ tail pad below if needed).
    x = jnp.concatenate([x1, x2], axis=1).astype(jnp.bfloat16)

    # Batch tiling: >=2 tiles whenever B allows (feeds both v7x TensorCores via the
    # "parallel" axis; no-op on v5e/v6e), rows a multiple of 16 (bf16 sublane packing),
    # capped at _TB_CAP.  Padding waste is < 16 rows per tile.
    n_tiles = max(2, -(-B // _TB_CAP))
    TB = max(16, _round_up(-(-B // n_tiles), 16))
    B_pad = _round_up(B, TB)
    if B_pad != B:
        x = jnp.pad(x, ((0, B_pad - B), (0, 0)))

    grid = (B_pad // TB,)

    def resident(shape):
        # Constant block index -> DMA'd once, stays VMEM-resident across all tiles.
        return pl.BlockSpec(shape, lambda i: (0, 0))

    out = pl.pallas_call(
        functools.partial(_critic_kernel, q0, q1),
        out_shape=jax.ShapeDtypeStruct((B_pad, 1), jnp.float32),
        grid=grid,
        in_specs=[
            pl.BlockSpec((TB, d_in), lambda i: (i, 0)),   # streamed activations
            resident((d_in, q0 + q1)),                    # block-diag [[W1,0],[0,W2b]] bf16
            resident((q0, q1)),                           # W2a bf16
            resident((1, q1)),                            # w3 row f32
            resident((8, 128)),                           # packed biases f32
        ],
        out_specs=pl.BlockSpec((TB, 1), lambda i: (i, 0)),
        compiler_params=pltpu.CompilerParams(
            dimension_semantics=("parallel",),
            vmem_limit_bytes=32 * 1024 * 1024),
    )(x, wbd, w2a, w3_row, bias)
    return out[:B, :]


def init_critic_params(key, nb_obs, nb_action, q_layer):
    """Raw f32 params, mirroring the PyTorch __init__ (same bounds/shapes)."""
    q0, q1 = q_layer
    ks = jax.random.split(key, 6)

    f1 = 1.0 / sqrt(nb_obs * q0)
    w1 = jax.random.uniform(ks[0], (nb_obs, q0), jnp.float32, -f1, f1)
    b1 = jax.random.uniform(ks[1], (q0,), jnp.float32,
                            -1.0 / sqrt(nb_obs), 1.0 / sqrt(nb_obs))

    f2 = 1.0 / sqrt((q0 + nb_action) * q1)
    w2 = jax.random.uniform(ks[2], (q0 + nb_action, q1), jnp.float32, -f2, f2)
    b2 = jax.random.uniform(ks[3], (q1,), jnp.float32,
                            -1.0 / sqrt(q0 + nb_action), 1.0 / sqrt(q0 + nb_action))

    w3 = jax.random.uniform(ks[4], (q1,), jnp.float32, -0.003, 0.003)
    b3 = jax.random.uniform(ks[5], (1,), jnp.float32,
                            -1.0 / sqrt(q1), 1.0 / sqrt(q1))

    return dict(w1=w1, b1=b1, w2=w2, b2=b2, w3=w3, b3=b3)


def pack_critic_params(raw, nb_obs, nb_action, q_layer):
    """One-time packing into the kernel's device layout (hoisted out of the per-call
    path): bf16 block-diagonal fused layer-1 weight, bf16 W2a, f32 w3 row, and all
    biases in one (8,128)-aligned f32 block."""
    q0, q1 = q_layer
    assert q0 + q1 <= 128 and q1 <= 128, "bias/weight packing assumes widths <= 128"
    d_in = nb_obs + nb_action

    wbd = jnp.zeros((d_in, q0 + q1), jnp.float32)
    wbd = wbd.at[:nb_obs, :q0].set(raw["w1"])            # x1 @ W1  -> cols [0, q0)
    wbd = wbd.at[nb_obs:, q0:].set(raw["w2"][q0:, :])    # x2 @ W2b -> cols [q0, q0+q1)
    wbd = wbd.astype(jnp.bfloat16)

    w2a = raw["w2"][:q0, :].astype(jnp.bfloat16)         # h1 @ W2a
    w3_row = raw["w3"].reshape(1, q1).astype(jnp.float32)

    bias = jnp.zeros((8, 128), jnp.float32)
    bias = bias.at[0, :q0].set(raw["b1"])                # row 0 = [b1 | 0...]
    bias = bias.at[1, :q1].set(raw["b2"])                # row 1 = b2
    bias = bias.at[2, 0].set(raw["b3"][0])               # row 2, lane 0 = b3
    return (wbd, w2a, w3_row, bias)


def critic_forward_ref(x1, x2, raw):
    """Pure-JAX f32 reference (matches the PyTorch forward exactly)."""
    h1 = jnp.maximum(x1 @ raw["w1"] + raw["b1"][None, :], 0.0)
    h = jnp.concatenate([h1, x2], axis=1)
    h2 = jnp.maximum(h @ raw["w2"] + raw["b2"][None, :], 0.0)
    return h2 @ raw["w3"][:, None] + raw["b3"][None, :]


if __name__ == "__main__":
    NB_OBS = 32
    NB_ACTION = 8
    Q_LAYER = (64, 32)

    key = jax.random.PRNGKey(0)
    kp, kx = jax.random.split(key)
    raw = init_critic_params(kp, NB_OBS, NB_ACTION, Q_LAYER)
    packed = pack_critic_params(raw, NB_OBS, NB_ACTION, Q_LAYER)

    ok = True
    # B=8: single padded tile. B=100: two tiles + the pad-to-TB path.
    for B in (8, 100):
        k1, k2 = jax.random.split(jax.random.fold_in(kx, B))
        x1 = jax.random.normal(k1, (B, NB_OBS), jnp.float32)
        x2 = jax.random.normal(k2, (B, NB_ACTION), jnp.float32)

        q = critic_forward(x1, x2, packed)
        jax.block_until_ready(q)

        q_ref = critic_forward_ref(x1, x2, raw)
        ok = ok and (q.shape == (B, 1))
        # bf16 streamed operands / f32 accumulation -> loosened tolerance vs f32 ref.
        ok = ok and bool(jnp.allclose(q, q_ref, atol=1e-2, rtol=1e-2))

    assert ok, "mismatch vs. reference"
    print("KERNEL_OK")
</pallas_src>

<mosaic_0001>
module attributes {stable_mosaic.version = 11 : i64} {
  func.func @_critic_kernel(%arg0: i32, %arg1: memref<16x40xbf16, #tpu.memory_space<vmem>>, %arg2: memref<40x96xbf16, #tpu.memory_space<vmem>>, %arg3: memref<64x32xbf16, #tpu.memory_space<vmem>>, %arg4: memref<1x32xf32, #tpu.memory_space<vmem>>, %arg5: memref<8x128xf32, #tpu.memory_space<vmem>>, %arg6: memref<16x1xf32, #tpu.memory_space<vmem>>) attributes {dimension_semantics = [#tpu.dimension_semantics<parallel>], iteration_bounds = array<i64: 1>, scalar_prefetch = 0 : i64, scratch_operands = 0 : i64, tpu.core_type = #tpu.core_type<tc>, window_params = [{transform_indices = @transform_0, window_bounds = array<i64: 16, 40>}, {pipeline_mode = #tpu.pipeline_mode<synchronous>, transform_indices = @transform_1, window_bounds = array<i64: 40, 96>}, {pipeline_mode = #tpu.pipeline_mode<synchronous>, transform_indices = @transform_2, window_bounds = array<i64: 64, 32>}, {pipeline_mode = #tpu.pipeline_mode<synchronous>, transform_indices = @transform_3, window_bounds = array<i64: 1, 32>}, {pipeline_mode = #tpu.pipeline_mode<synchronous>, transform_indices = @transform_4, window_bounds = array<i64: 8, 128>}, {transform_indices = @transform_5, window_bounds = array<i64: 16, 1>}]} {
    %c0 = arith.constant 0 : index
    %c0_0 = arith.constant 0 : index
    %0 = vector.load %arg1[%c0, %c0_0] : memref<16x40xbf16, #tpu.memory_space<vmem>>, vector<16x40xbf16>
    %c0_1 = arith.constant 0 : index
    %c0_2 = arith.constant 0 : index
    %1 = vector.load %arg2[%c0_1, %c0_2] : memref<40x96xbf16, #tpu.memory_space<vmem>>, vector<40x96xbf16>
    %cst = arith.constant dense<0.000000e+00> : vector<16x96xf32>
    %2 = tpu.matmul %0, %1, %cst {dimension_numbers = #tpu.dot_dimension_numbers<[1], [0], [0], [1], [0, 0, 1, 1], [], []>} : vector<16x40xbf16>, vector<40x96xbf16>, vector<16x96xf32> -> vector<16x96xf32>
    %c0_3 = arith.constant 0 : index
    %c0_4 = arith.constant 0 : index
    %3 = vector.load %arg5[%c0_3, %c0_4] : memref<8x128xf32, #tpu.memory_space<vmem>>, vector<1x96xf32>
    %4 = vector.broadcast %3 : vector<1x96xf32> to vector<16x96xf32>
    %5 = arith.addf %2, %4 : vector<16x96xf32>
    %6 = vector.extract_strided_slice %5 {offsets = [0, 0], sizes = [16, 64], strides = [1, 1]} : vector<16x96xf32> to vector<16x64xf32>
    %cst_5 = arith.constant 0.000000e+00 : f32
    %7 = vector.broadcast %cst_5 : f32 to vector<16x64xf32>
    %8 = arith.maximumf %6, %7 : vector<16x64xf32>
    %9 = arith.truncf %8 : vector<16x64xf32> to vector<16x64xbf16>
    %c0_6 = arith.constant 0 : index
    %c0_7 = arith.constant 0 : index
    %10 = vector.load %arg3[%c0_6, %c0_7] : memref<64x32xbf16, #tpu.memory_space<vmem>>, vector<64x32xbf16>
    %cst_8 = arith.constant dense<0.000000e+00> : vector<16x32xf32>
    %11 = tpu.matmul %9, %10, %cst_8 {dimension_numbers = #tpu.dot_dimension_numbers<[1], [0], [0], [1], [0, 0, 1, 1], [], []>} : vector<16x64xbf16>, vector<64x32xbf16>, vector<16x32xf32> -> vector<16x32xf32>
    %12 = vector.extract_strided_slice %5 {offsets = [0, 64], sizes = [16, 32], strides = [1, 1]} : vector<16x96xf32> to vector<16x32xf32>
    %13 = arith.addf %11, %12 : vector<16x32xf32>
    %c1 = arith.constant 1 : index
    %c0_9 = arith.constant 0 : index
    %14 = vector.load %arg5[%c1, %c0_9] : memref<8x128xf32, #tpu.memory_space<vmem>>, vector<1x32xf32>
    %15 = vector.broadcast %14 : vector<1x32xf32> to vector<16x32xf32>
    %16 = arith.addf %13, %15 : vector<16x32xf32>
    %cst_10 = arith.constant 0.000000e+00 : f32
    %17 = vector.broadcast %cst_10 : f32 to vector<16x32xf32>
    %18 = arith.maximumf %16, %17 : vector<16x32xf32>
    %c0_11 = arith.constant 0 : index
    %c0_12 = arith.constant 0 : index
    %19 = vector.load %arg4[%c0_11, %c0_12] : memref<1x32xf32, #tpu.memory_space<vmem>>, vector<1x32xf32>
    %20 = vector.broadcast %19 : vector<1x32xf32> to vector<16x32xf32>
    %21 = arith.mulf %18, %20 : vector<16x32xf32>
    %cst_13 = arith.constant dense<0.000000e+00> : vector<16xf32>
    %22 = vector.multi_reduction <add>, %21, %cst_13 [1] : vector<16x32xf32> to vector<16xf32>
    %23 = vector.shape_cast %22 : vector<16xf32> to vector<16x1xf32>
    %c2 = arith.constant 2 : index
    %c0_14 = arith.constant 0 : index
    %24 = vector.load %arg5[%c2, %c0_14] : memref<8x128xf32, #tpu.memory_space<vmem>>, vector<1x1xf32>
    %25 = vector.broadcast %24 : vector<1x1xf32> to vector<16x1xf32>
    %26 = arith.addf %23, %25 : vector<16x1xf32>
    %c0_15 = arith.constant 0 : index
    %c0_16 = arith.constant 0 : index
    %27 = vector.load %arg6[%c0_15, %c0_16] : memref<16x1xf32, #tpu.memory_space<vmem>>, vector<16x1xf32>
    tpu.vector_store %arg6[%c0_15, %c0_16], %26 {strides = array<i32>} : memref<16x1xf32, #tpu.memory_space<vmem>>, vector<16x1xf32>,
    return
  }
  func.func @transform_0(%arg0: i32) -> (i32, i32) {
    %c0_i32 = arith.constant 0 : i32
    %c0_i32_0 = arith.constant 0 : i32
    return %arg0, %c0_i32 : i32, i32
  }
  func.func @transform_1(%arg0: i32) -> (i32, i32) {
    %c0_i32 = arith.constant 0 : i32
    %c0_i32_0 = arith.constant 0 : i32
    %c0_i32_1 = arith.constant 0 : i32
    return %c0_i32, %c0_i32_0 : i32, i32
  }
  func.func @transform_2(%arg0: i32) -> (i32, i32) {
    %c0_i32 = arith.constant 0 : i32
    %c0_i32_0 = arith.constant 0 : i32
    %c0_i32_1 = arith.constant 0 : i32
    return %c0_i32, %c0_i32_0 : i32, i32
  }
  func.func @transform_3(%arg0: i32) -> (i32, i32) {
    %c0_i32 = arith.constant 0 : i32
    %c0_i32_0 = arith.constant 0 : i32
    %c0_i32_1 = arith.constant 0 : i32
    return %c0_i32, %c0_i32_0 : i32, i32
  }
  func.func @transform_4(%arg0: i32) -> (i32, i32) {
    %c0_i32 = arith.constant 0 : i32
    %c0_i32_0 = arith.constant 0 : i32
    %c0_i32_1 = arith.constant 0 : i32
    return %c0_i32, %c0_i32_0 : i32, i32
  }
  func.func @transform_5(%arg0: i32) -> (i32, i32) {
    %c0_i32 = arith.constant 0 : i32
    %c0_i32_0 = arith.constant 0 : i32
    return %arg0, %c0_i32 : i32, i32
  }
}

</mosaic_0001>

<bundles_post_ra>
// kernel: critic_forward.1
= control target key start
LH: loop header
LB: loop body
LE: loop exit
PB: predicated region body
PF: predicated region fallthrough
CT: control target
= control target key end

     0   :  { %v285_v0 = vmov 0.0   ;;  %vm286_vm0 = vmmov 0   ;;  %vm57_vm1 = vcmask 1043456   ;;  %vm53_vm2 = vcmask 326656   ;;  %s360_s1 = inlined_call_operand.vmem [shape: bf16[40,96], index: 1, kind: input, shape index: {}]   ;;  %s361_s0 = inlined_call_operand.vmem [shape: bf16[16,40], index: 0, kind: input, shape index: {}]   ;;  %s362_s2 = inlined_call_operand.vmem [shape: bf16[64,32], index: 2, kind: input, shape index: {}]   ;;  %s363_s4 = inlined_call_operand.vmem [shape: f32[8,128], index: 4, kind: input, shape index: {}]   ;;  %s364_s3 = inlined_call_operand.vmem [shape: f32[1,32], index: 3, kind: input, shape index: {}]   ;;  %s365_s5 = inlined_call_operand.vmem [shape: f32[16,1], index: 5, kind: output, shape index: {}]  }
   0x1   :  { %252 = vmatprep.subr.bf16.mxu0 %v285_v0  ;;  %v277_v1 = vld [vmem:[%s360_s1] sm:$0xff]   ;;  %258 = vmatprep.mubr.msk.bf16.mxu0 %vm286_vm0, %v285_v0  ;;  %v278_v2 = vld [vmem:[%s360_s1 + $0x8] sm:$0xff]   ;;  %v279_v3 = vld [vmem:[%s360_s1 + $0x10] ss:$0 sps:$4 sm:$0xff]   ;;  %vm145_vm3 = vcmask 523264   ;;  %vm208_vm4 = vcmask 261120  }
   0x2   :  { %262 = vmatprep.subr.bf16.mxu1 %v285_v0  ;;  %270 = vmatprep.mubr.msk.bf16.mxu1 %vm286_vm0, %v285_v0  ;;  %v281_v4 = vld [vmem:[%s362_s2] sm:$0xff]   ;;  %v282_v5 = vld [vmem:[%s362_s2 + $0x8] sm:$0xff]   ;;  %v59_v6 = vsel %vm57_vm1, %v279_v3, 0  ;;  %v283_v8 = vld [vmem:[%s362_s2 + $0x10] sm:$0xff]   ;;  %vm222_vm5 = vcmask 7168  }
   0x3   :  { %253 = vmatpush3.bf16.msra.mxu0 %v277_v1  ;;  %263 = vmatpush3.bf16.msra.mxu1 %v281_v4  ;;  %v280_v7 = vld [vmem:[%s361_s0] sm:$0xff]   ;;  %v284_v9 = vld [vmem:[%s362_s2 + $0x18] sm:$0xff]   ;;  %s287_s0 = smov 64  }
   0x4   :  { %254 = vmatprep.subr.bf16.mxu0 %v285_v0  ;;  %264 = vmatprep.subr.bf16.mxu1 %v285_v0  ;;  %v229_v10 = vld [vmem:[%s363_s4] ss:$0 sm:$0xff]  ;;  %v240_v22 = vld [vmem:[%s363_s4 + $0x1] ss:$0 sm:$0xff]  ;;  %v242_v38 = vld [vmem:[%s363_s4 + $0x2] ss:$0 sm:$0xff] }
   0x5   :  { %v241_v30 = vld [vmem:[%s364_s3] ss:$0 sm:$0xff] }
   0x7   :  { %255 = vmatpush3.bf16.msra.mxu0 %v278_v2  ;;  %265 = vmatpush3.bf16.msra.mxu1 %v282_v5 }
   0x8   :  { %256 = vmatprep.subr.bf16.mxu0 %v285_v0  ;;  %266 = vmatprep.subr.bf16.mxu1 %v285_v0 }
   0xb   :  { %257 = vmatpush3.bf16.msra.mxu0 %v59_v6  ;;  %267 = vmatpush3.bf16.msra.mxu1 %v283_v8 }
   0xc   :  { %268 = vmatprep.subr.bf16.mxu1 %v285_v0 }
   0xe   :  { %259 = vmatmul.mubr.msk.bf16.vlgmr.msra.gmra.mrb[0].mxu0 %vm53_vm2, %v280_v7 }
   0xf   :  { %269 = vmatpush3.bf16.msra.mxu1 %v284_v9 }
  0xe1   :  { %v95_v11 = vpop.f32.mrb[0].mxu0 }
  0xe2   :  { %v96_v12 = vadd.f32 %v229_v10, %v95_v11  ;;  %v260_v13 = vpop.f32.mrb[1].mxu0 }
  0xe3   :  { %v98_v14 = vpop.f32.mrb[2].mxu0 }
  0xe4   :  { %v99_v15 = vadd.f32 %v229_v10, %v98_v14  ;;  %139 = vrot.lane.b32.xlu0 %v96_v12, %s287_s0  ;;  %v261_v16 = vpop.f32.mrb[3].mxu0  ;;  %v102_v17 = vmax.f32 %v96_v12, 0.0 }
  0xe6   :  { %v103_v18 = vmax.f32 %v99_v15, 0.0 }
  0xe8   :  { %v104_v19 = vpack.c.bf16 %v103_v18, %v102_v17  ;;  %141 = vrot.lane.b32.xlu0 %v99_v15, %s287_s0 }
  0xea   :  { %271 = vmatmul.mubr.msk.bf16.vlgmr.msra.gmra.mrb[0].mxu1 %vm145_vm3, %v104_v19 }
 0x156   :  { %v140_v20 = vpop.permute.xlu0 %139 }
 0x15a   :  { %v142_v25 = vpop.permute.xlu0 %141 }
 0x1bd   :  { %v183_v21 = vpop.f32.mrb[0].mxu1 }
 0x1be   :  { %v184_v23 = vadd.f32 %v183_v21, %v140_v20  ;;  %v272_v24 = vpop.f32.mrb[1].mxu1 }
 0x1bf   :  { %v186_v26 = vpop.f32.mrb[2].mxu1 }
 0x1c0   :  { %v195_v27 = vadd.f32 %v240_v22, %v184_v23  ;;  %v187_v28 = vadd.f32 %v186_v26, %v142_v25  ;;  %v273_v29 = vpop.f32.mrb[3].mxu1 }
 0x1c2   :  { %v197_v31 = vmax.f32 %v195_v27, 0.0  ;;  %v196_v32 = vadd.f32 %v240_v22, %v187_v28 }
 0x1c4   :  { %v198_v33 = vmax.f32 %v196_v32, 0.0  ;;  %v206_v34 = vmul.f32 %v241_v30, %v197_v31 }
 0x1c6   :  { %v209_v35 = vsel %vm208_vm4, %v206_v34, 0.0  ;;  %v207_v36 = vmul.f32 %v241_v30, %v198_v33 }
 0x1c7   :  { %210 = vadd.xlane.f32.xlu1 %v209_v35 }
 0x1c8   :  { %v212_v37 = vsel %vm208_vm4, %v207_v36, 0.0 }
 0x1cb   :  { %213 = vadd.xlane.f32.xlu1 %v212_v37 }
 0x254   :  { %v211_v39 = vpop.xlane.xlu1 %210 }
 0x255   :  { %v220_v40 = vadd.f32 %v242_v38, %v211_v39 }
 0x257   :  { %223 = vst.msk [vmem:[%s365_s5] sm:$0xff] %vm222_vm5, %v220_v40 }
 0x258   :  { %v214_v41 = vpop.xlane.xlu1 %213 }
 0x259   :  { %v221_v42 = vadd.f32 %v242_v38, %v214_v41 }
 0x25b   :  { %224 = vst.msk [vmem:[%s365_s5 + $0x8] sm:$0xff] %vm222_vm5, %v221_v42 }

</bundles_post_ra>
